<compile_context>
chip_gen: v6e
topology: v6e:2x2x1
jax: 0.10.0
libtpu: 0.0.40
codegen_flags: <defaults>
</compile_context>

<pallas_src>
import jax
import jax.numpy as jnp
from jax import lax
from jax.experimental import pallas as pl
from jax.experimental.pallas import tpu as pltpu


# ---------------------------------------------------------------------------
# Fused Pallas kernel
# ---------------------------------------------------------------------------
def _gcn_encoder_kernel(
    x_ref, adj_ref,
    w1x_ref,                       # fused first-layer projection [in, 2*out]
    be1_ref, bc1_ref,              # enc1 / conv1 biases
    we2_ref, be2_ref, we3_ref, be3_ref,     # encoder MLP layers 2, 3
    wc2_ref, bc2_ref, wc3_ref, bc3_ref,     # GCN conv2 / conv_out
    o_ref,
):
    f32 = jnp.float32
    x = x_ref[...]
    oc = be1_ref.shape[-1]                     # out_channels (static)

    # ---- shared first projection of x (enc1 + conv1 in one MXU matmul) ----
    xw = jnp.dot(x, w1x_ref[...], preferred_element_type=f32)   # (N, 2*oc)

    # ---- self-feature branch: 3-layer MLP --------------------------------
    h = jnp.maximum(xw[:, :oc] + be1_ref[...], 0.0)
    h = jnp.dot(h, we2_ref[...], preferred_element_type=f32) + be2_ref[...]
    h = jnp.maximum(h, 0.0)
    self_feat = jnp.dot(h, we3_ref[...], preferred_element_type=f32) + be3_ref[...]

    # ---- symmetric-normalized adjacency (computed once, reused 3x) -------
    adj = adj_ref[...]
    n = adj.shape[0]
    row = lax.broadcasted_iota(jnp.int32, (n, n), 0)
    col = lax.broadcasted_iota(jnp.int32, (n, n), 1)
    adj = jnp.where(row == col, f32(1.0), adj)                     # diagonal := 1
    deg = jnp.maximum(jnp.sum(adj, axis=-1, keepdims=True), 1.0)   # clamp(min=1)
    dinv = lax.rsqrt(deg)                                          # deg^-0.5 (EUP)
    adj_n = dinv * adj * dinv.T                                    # D^-1/2 A' D^-1/2

    # ---- graph branch: 3 GCN convs (project then aggregate, as in PyG) ---
    # conv1: projection already done above in the fused matmul.
    g = jnp.dot(adj_n, xw[:, oc:], preferred_element_type=f32) + bc1_ref[...]
    g = jnp.maximum(g, 0.0)

    # conv2: out -> out
    gw = jnp.dot(g, wc2_ref[...], preferred_element_type=f32)
    g = jnp.dot(adj_n, gw, preferred_element_type=f32) + bc2_ref[...]
    g = jnp.maximum(g, 0.0)

    # conv_out: out -> out//2 (shrink features first, then aggregate)
    gw = jnp.dot(g, wc3_ref[...], preferred_element_type=f32)
    graph_feat = jnp.dot(adj_n, gw, preferred_element_type=f32) + bc3_ref[...]

    # ---- concat([self_feat, graph_feat], -1) as one lane-contiguous slab --
    o_ref[...] = jnp.concatenate([self_feat, graph_feat], axis=-1).astype(o_ref.dtype)


# ---------------------------------------------------------------------------
# pallas_call wrapper (single fused call, full-array blocks, no grid)
# ---------------------------------------------------------------------------
def _full_spec(shape):
    return pl.BlockSpec(shape, lambda: tuple(0 for _ in shape))


def gcn_encoder_forward(params, x, adj):
    n_nodes = x.shape[0]
    out_channels = params["enc1"][0].shape[0]

    # Layout plumbing in the wrapper (free): PyTorch [out, in] -> [in, out]
    # so the MXU RHS is lane-dense; biases broadcast as [1, out].
    def wt(p):
        w, b = p
        return w.T, b.reshape(1, -1)

    we1, be1 = wt(params["enc1"])
    we2, be2 = wt(params["enc2"])
    we3, be3 = wt(params["enc3"])
    wc1, bc1 = wt(params["conv1"])
    wc2, bc2 = wt(params["conv2"])
    wc3, bc3 = wt(params["conv_out"])

    # enc1 and conv1 both consume raw x -> fuse their projections into one RHS.
    w1x = jnp.concatenate([we1, wc1], axis=1)          # [in, 2*out]

    args = (x, adj,
            w1x, be1, bc1,
            we2, be2, we3, be3,
            wc2, bc2, wc3, bc3)

    return pl.pallas_call(
        _gcn_encoder_kernel,
        out_shape=jax.ShapeDtypeStruct((n_nodes, out_channels), jnp.float32),
        in_specs=[_full_spec(a.shape) for a in args],
        out_specs=_full_spec((n_nodes, out_channels)),
        compiler_params=pltpu.CompilerParams(vmem_limit_bytes=32 * 1024 * 1024),
    )(*args)


# ---------------------------------------------------------------------------
# Pure-JAX reference (for in-script verification)
# ---------------------------------------------------------------------------
def _reference_forward(params, x, adj):
    def lin(p, h, relu):
        w, b = p
        y = h @ w.T + b
        return jnp.maximum(y, 0.0) if relu else y

    def conv(p, h, adj_n, relu):
        w, b = p
        y = adj_n @ (h @ w.T) + b
        return jnp.maximum(y, 0.0) if relu else y

    h = lin(params["enc1"], x, True)
    h = lin(params["enc2"], h, True)
    self_feat = lin(params["enc3"], h, False)

    n = adj.shape[0]
    a = jnp.where(jnp.eye(n, dtype=bool), 1.0, adj)
    deg = jnp.maximum(jnp.sum(a, axis=-1, keepdims=True), 1.0)
    dinv = lax.rsqrt(deg)
    adj_n = dinv * a * dinv.T

    g = conv(params["conv1"], x, adj_n, True)
    g = conv(params["conv2"], g, adj_n, True)
    graph_feat = conv(params["conv_out"], g, adj_n, False)
    return jnp.concatenate([self_feat, graph_feat], axis=-1)


# ---------------------------------------------------------------------------
# Parameters (deterministic synthetic init, PyTorch Linear weight layout)
# ---------------------------------------------------------------------------
def init_params(key, in_channels, out_channels):
    half = out_channels // 2

    def lin(k, fan_out, fan_in):
        kw, kb = jax.random.split(k)
        w = jax.random.normal(kw, (fan_out, fan_in), jnp.float32) * 0.1
        b = jax.random.normal(kb, (fan_out,), jnp.float32) * 0.1
        return w, b

    keys = jax.random.split(key, 6)
    return {
        "enc1": lin(keys[0], out_channels, in_channels),
        "enc2": lin(keys[1], out_channels, out_channels),
        "enc3": lin(keys[2], half, out_channels),
        "conv1": lin(keys[3], out_channels, in_channels),
        "conv2": lin(keys[4], out_channels, out_channels),
        "conv_out": lin(keys[5], half, out_channels),
    }


# ---------------------------------------------------------------------------
if __name__ == "__main__":
    N = 8            # number of nodes
    in_channels = 4
    out_channels = 32

    key = jax.random.PRNGKey(0)
    kx, ka, kp = jax.random.split(key, 3)

    x = jax.random.normal(kx, (N, in_channels), jnp.float32)
    # random symmetric 0/1 adjacency (no self loops; kernel adds them)
    a = (jax.random.uniform(ka, (N, N)) > 0.5).astype(jnp.float32)
    adj = jnp.maximum(a, a.T) * (1.0 - jnp.eye(N, dtype=jnp.float32))

    params = init_params(kp, in_channels, out_channels)

    out = jax.jit(gcn_encoder_forward)(params, x, adj)
    out = jax.block_until_ready(out)

    ref = _reference_forward(params, x, adj)

    assert out.shape == (N, out_channels), out.shape
    assert bool(jnp.all(jnp.isfinite(out)))
    assert bool(jnp.allclose(out, ref, atol=1e-4, rtol=1e-4)), \
        float(jnp.max(jnp.abs(out - ref)))
    print("KERNEL_OK")
</pallas_src>

<mosaic_0001>
module attributes {stable_mosaic.version = 11 : i64} {
  func.func @_gcn_encoder_kernel(%arg0: memref<8x4xf32, #tpu.memory_space<vmem>>, %arg1: memref<8x8xf32, #tpu.memory_space<vmem>>, %arg2: memref<4x64xf32, #tpu.memory_space<vmem>>, %arg3: memref<1x32xf32, #tpu.memory_space<vmem>>, %arg4: memref<1x32xf32, #tpu.memory_space<vmem>>, %arg5: memref<32x32xf32, #tpu.memory_space<vmem>>, %arg6: memref<1x32xf32, #tpu.memory_space<vmem>>, %arg7: memref<32x16xf32, #tpu.memory_space<vmem>>, %arg8: memref<1x16xf32, #tpu.memory_space<vmem>>, %arg9: memref<32x32xf32, #tpu.memory_space<vmem>>, %arg10: memref<1x32xf32, #tpu.memory_space<vmem>>, %arg11: memref<32x16xf32, #tpu.memory_space<vmem>>, %arg12: memref<1x16xf32, #tpu.memory_space<vmem>>, %arg13: memref<8x32xf32, #tpu.memory_space<vmem>>) attributes {dimension_semantics = [], scalar_prefetch = 0 : i64, scratch_operands = 0 : i64, tpu.core_type = #tpu.core_type<tc>} {
    %c0 = arith.constant 0 : index
    %c0_0 = arith.constant 0 : index
    %0 = vector.load %arg0[%c0, %c0_0] : memref<8x4xf32, #tpu.memory_space<vmem>>, vector<8x4xf32>
    %c0_1 = arith.constant 0 : index
    %c0_2 = arith.constant 0 : index
    %1 = vector.load %arg2[%c0_1, %c0_2] : memref<4x64xf32, #tpu.memory_space<vmem>>, vector<4x64xf32>
    %cst = arith.constant dense<0.000000e+00> : vector<8x64xf32>
    %2 = tpu.matmul %0, %1, %cst {dimension_numbers = #tpu.dot_dimension_numbers<[1], [0], [0], [1], [0, 0, 1, 1], [], []>} : vector<8x4xf32>, vector<4x64xf32>, vector<8x64xf32> -> vector<8x64xf32>
    %3 = vector.extract_strided_slice %2 {offsets = [0, 0], sizes = [8, 32], strides = [1, 1]} : vector<8x64xf32> to vector<8x32xf32>
    %c0_3 = arith.constant 0 : index
    %c0_4 = arith.constant 0 : index
    %4 = vector.load %arg3[%c0_3, %c0_4] : memref<1x32xf32, #tpu.memory_space<vmem>>, vector<1x32xf32>
    %5 = vector.broadcast %4 : vector<1x32xf32> to vector<8x32xf32>
    %6 = arith.addf %3, %5 : vector<8x32xf32>
    %cst_5 = arith.constant 0.000000e+00 : f32
    %7 = vector.broadcast %cst_5 : f32 to vector<8x32xf32>
    %8 = arith.maximumf %6, %7 : vector<8x32xf32>
    %c0_6 = arith.constant 0 : index
    %c0_7 = arith.constant 0 : index
    %9 = vector.load %arg5[%c0_6, %c0_7] : memref<32x32xf32, #tpu.memory_space<vmem>>, vector<32x32xf32>
    %cst_8 = arith.constant dense<0.000000e+00> : vector<8x32xf32>
    %10 = tpu.matmul %8, %9, %cst_8 {dimension_numbers = #tpu.dot_dimension_numbers<[1], [0], [0], [1], [0, 0, 1, 1], [], []>} : vector<8x32xf32>, vector<32x32xf32>, vector<8x32xf32> -> vector<8x32xf32>
    %c0_9 = arith.constant 0 : index
    %c0_10 = arith.constant 0 : index
    %11 = vector.load %arg6[%c0_9, %c0_10] : memref<1x32xf32, #tpu.memory_space<vmem>>, vector<1x32xf32>
    %12 = vector.broadcast %11 : vector<1x32xf32> to vector<8x32xf32>
    %13 = arith.addf %10, %12 : vector<8x32xf32>
    %cst_11 = arith.constant 0.000000e+00 : f32
    %14 = vector.broadcast %cst_11 : f32 to vector<8x32xf32>
    %15 = arith.maximumf %13, %14 : vector<8x32xf32>
    %c0_12 = arith.constant 0 : index
    %c0_13 = arith.constant 0 : index
    %16 = vector.load %arg7[%c0_12, %c0_13] : memref<32x16xf32, #tpu.memory_space<vmem>>, vector<32x16xf32>
    %cst_14 = arith.constant dense<0.000000e+00> : vector<8x16xf32>
    %17 = tpu.matmul %15, %16, %cst_14 {dimension_numbers = #tpu.dot_dimension_numbers<[1], [0], [0], [1], [0, 0, 1, 1], [], []>} : vector<8x32xf32>, vector<32x16xf32>, vector<8x16xf32> -> vector<8x16xf32>
    %c0_15 = arith.constant 0 : index
    %c0_16 = arith.constant 0 : index
    %18 = vector.load %arg8[%c0_15, %c0_16] : memref<1x16xf32, #tpu.memory_space<vmem>>, vector<1x16xf32>
    %19 = vector.broadcast %18 : vector<1x16xf32> to vector<8x16xf32>
    %20 = arith.addf %17, %19 : vector<8x16xf32>
    %c0_17 = arith.constant 0 : index
    %c0_18 = arith.constant 0 : index
    %21 = vector.load %arg1[%c0_17, %c0_18] : memref<8x8xf32, #tpu.memory_space<vmem>>, vector<8x8xf32>
    %22 = tpu.iota {dimensions = array<i32: 0>} : vector<8x8xi32>
    %23 = tpu.iota {dimensions = array<i32: 1>} : vector<8x8xi32>
    %24 = arith.cmpi eq, %22, %23 : vector<8x8xi32>
    %cst_19 = arith.constant 1.000000e+00 : f32
    %25 = vector.broadcast %cst_19 : f32 to vector<8x8xf32>
    %26 = arith.select %24, %25, %21 : vector<8x8xi1>, vector<8x8xf32>
    %cst_20 = arith.constant dense<0.000000e+00> : vector<8xf32>
    %27 = vector.multi_reduction <add>, %26, %cst_20 [1] : vector<8x8xf32> to vector<8xf32>
    %28 = vector.shape_cast %27 : vector<8xf32> to vector<8x1xf32>
    %cst_21 = arith.constant 1.000000e+00 : f32
    %29 = vector.broadcast %cst_21 : f32 to vector<8x1xf32>
    %30 = arith.maximumf %28, %29 : vector<8x1xf32>
    %31 = math.rsqrt %30 : vector<8x1xf32>
    %32 = vector.broadcast %31 : vector<8x1xf32> to vector<8x8xf32>
    %33 = arith.mulf %32, %26 : vector<8x8xf32>
    %34 = tpu.transpose %31, [1, 0] : vector<8x1xf32> -> vector<1x8xf32>
    %35 = vector.broadcast %34 : vector<1x8xf32> to vector<8x8xf32>
    %36 = arith.mulf %33, %35 : vector<8x8xf32>
    %37 = vector.extract_strided_slice %2 {offsets = [0, 32], sizes = [8, 32], strides = [1, 1]} : vector<8x64xf32> to vector<8x32xf32>
    %cst_22 = arith.constant dense<0.000000e+00> : vector<8x32xf32>
    %38 = tpu.matmul %36, %37, %cst_22 {dimension_numbers = #tpu.dot_dimension_numbers<[1], [0], [0], [1], [0, 0, 1, 1], [], []>} : vector<8x8xf32>, vector<8x32xf32>, vector<8x32xf32> -> vector<8x32xf32>
    %c0_23 = arith.constant 0 : index
    %c0_24 = arith.constant 0 : index
    %39 = vector.load %arg4[%c0_23, %c0_24] : memref<1x32xf32, #tpu.memory_space<vmem>>, vector<1x32xf32>
    %40 = vector.broadcast %39 : vector<1x32xf32> to vector<8x32xf32>
    %41 = arith.addf %38, %40 : vector<8x32xf32>
    %cst_25 = arith.constant 0.000000e+00 : f32
    %42 = vector.broadcast %cst_25 : f32 to vector<8x32xf32>
    %43 = arith.maximumf %41, %42 : vector<8x32xf32>
    %c0_26 = arith.constant 0 : index
    %c0_27 = arith.constant 0 : index
    %44 = vector.load %arg9[%c0_26, %c0_27] : memref<32x32xf32, #tpu.memory_space<vmem>>, vector<32x32xf32>
    %cst_28 = arith.constant dense<0.000000e+00> : vector<8x32xf32>
    %45 = tpu.matmul %43, %44, %cst_28 {dimension_numbers = #tpu.dot_dimension_numbers<[1], [0], [0], [1], [0, 0, 1, 1], [], []>} : vector<8x32xf32>, vector<32x32xf32>, vector<8x32xf32> -> vector<8x32xf32>
    %cst_29 = arith.constant dense<0.000000e+00> : vector<8x32xf32>
    %46 = tpu.matmul %36, %45, %cst_29 {dimension_numbers = #tpu.dot_dimension_numbers<[1], [0], [0], [1], [0, 0, 1, 1], [], []>} : vector<8x8xf32>, vector<8x32xf32>, vector<8x32xf32> -> vector<8x32xf32>
    %c0_30 = arith.constant 0 : index
    %c0_31 = arith.constant 0 : index
    %47 = vector.load %arg10[%c0_30, %c0_31] : memref<1x32xf32, #tpu.memory_space<vmem>>, vector<1x32xf32>
    %48 = vector.broadcast %47 : vector<1x32xf32> to vector<8x32xf32>
    %49 = arith.addf %46, %48 : vector<8x32xf32>
    %cst_32 = arith.constant 0.000000e+00 : f32
    %50 = vector.broadcast %cst_32 : f32 to vector<8x32xf32>
    %51 = arith.maximumf %49, %50 : vector<8x32xf32>
    %c0_33 = arith.constant 0 : index
    %c0_34 = arith.constant 0 : index
    %52 = vector.load %arg11[%c0_33, %c0_34] : memref<32x16xf32, #tpu.memory_space<vmem>>, vector<32x16xf32>
    %cst_35 = arith.constant dense<0.000000e+00> : vector<8x16xf32>
    %53 = tpu.matmul %51, %52, %cst_35 {dimension_numbers = #tpu.dot_dimension_numbers<[1], [0], [0], [1], [0, 0, 1, 1], [], []>} : vector<8x32xf32>, vector<32x16xf32>, vector<8x16xf32> -> vector<8x16xf32>
    %cst_36 = arith.constant dense<0.000000e+00> : vector<8x16xf32>
    %54 = tpu.matmul %36, %53, %cst_36 {dimension_numbers = #tpu.dot_dimension_numbers<[1], [0], [0], [1], [0, 0, 1, 1], [], []>} : vector<8x8xf32>, vector<8x16xf32>, vector<8x16xf32> -> vector<8x16xf32>
    %c0_37 = arith.constant 0 : index
    %c0_38 = arith.constant 0 : index
    %55 = vector.load %arg12[%c0_37, %c0_38] : memref<1x16xf32, #tpu.memory_space<vmem>>, vector<1x16xf32>
    %56 = vector.broadcast %55 : vector<1x16xf32> to vector<8x16xf32>
    %57 = arith.addf %54, %56 : vector<8x16xf32>
    %58 = tpu.concatenate %20, %57 in 1 : vector<8x16xf32>, vector<8x16xf32> -> vector<8x32xf32>
    %c0_39 = arith.constant 0 : index
    %c0_40 = arith.constant 0 : index
    %59 = vector.load %arg13[%c0_39, %c0_40] : memref<8x32xf32, #tpu.memory_space<vmem>>, vector<8x32xf32>
    tpu.vector_store %arg13[%c0_39, %c0_40], %58 {strides = array<i32>} : memref<8x32xf32, #tpu.memory_space<vmem>>, vector<8x32xf32>,
    return
  }
}

</mosaic_0001>

<bundles_post_ra>
// kernel: gcn_encoder_forward.1
= control target key start
LH: loop header
LB: loop body
LE: loop exit
PB: predicated region body
PF: predicated region fallthrough
CT: control target
= control target key end

     0   :  { %vm51_vm0 = vcmask 1043456   ;;  %v305_v2 = vlaneseq  ;;  %v906_v3 = vmov 0.0   ;;  %vm907_vm1 = vmmov 0   ;;  %s1104_s0 = inlined_call_operand.vmem [shape: f32[8,4], index: 0, kind: input, shape index: {}]   ;;  %s1105_s1 = inlined_call_operand.vmem [shape: f32[8,8], index: 1, kind: input, shape index: {}]   ;;  %s1106_s2 = inlined_call_operand.vmem [shape: f32[4,64], index: 2, kind: input, shape index: {}]   ;;  %s1107_s3 = inlined_call_operand.vmem [shape: f32[1,32], index: 3, kind: input, shape index: {}]   ;;  %s1108_s4 = inlined_call_operand.vmem [shape: f32[1,32], index: 4, kind: input, shape index: {}]   ;;  %s1109_s5 = inlined_call_operand.vmem [shape: f32[32,32], index: 5, kind: input, shape index: {}]   ;;  %s1110_s6 = inlined_call_operand.vmem [shape: f32[1,32], index: 6, kind: input, shape index: {}]   ;;  %s1111_s7 = inlined_call_operand.vmem [shape: f32[32,16], index: 7, kind: input, shape index: {}]   ;;  %s1112_s8 = inlined_call_operand.vmem [shape: f32[1,16], index: 8, kind: input, shape index: {}]   ;;  %s1113_s9 = inlined_call_operand.vmem [shape: f32[32,32], index: 9, kind: input, shape index: {}]   ;;  %s1114_s10 = inlined_call_operand.vmem [shape: f32[1,32], index: 10, kind: input, shape index: {}]   ;;  %s1115_s11 = inlined_call_operand.vmem [shape: f32[32,16], index: 11, kind: input, shape index: {}]   ;;  %s1116_s12 = inlined_call_operand.vmem [shape: f32[1,16], index: 12, kind: input, shape index: {}]   ;;  %s1117_s13 = inlined_call_operand.hbm [shape: f32[8,32], index: 13, kind: output, shape index: {}]  }
   0x1   :  { %v46_v0 = vld [vmem:[%s1106_s2] sm:$0xf]  ;;  %813 = vmatprep.subr.mxu0 %v906_v3  ;;  %815 = vmatprep.mubr.msk.f32.mxu0 %vm907_vm1, %v906_v3  ;;  %vm47_vm2 = vcmask 31744  }
   0x2   :  { %v45_v1 = vld [vmem:[%s1104_s0] sm:$0xff] }
   0x3   :  { %18 = vsyncpa [#allocation3], 0  ;;  %814 = vmatpush3.msk.msra.mxu0 %vm51_vm0, %v46_v0  ;;  %v304_v4 = vld [vmem:[%s1105_s1] sm:$0xff]  ;;  %v306_v5 = vshrl.u32 %v305_v2, 7  ;;  %v308_v6 = vand.u32 127, %v305_v2  ;;  %818 = vmatprep.subr.mxu1 %v906_v3  ;;  %vm311_vm3 = vcmask 64512  }
   0x4   :  { %816 = vmatmul.mubr.msk.f32.vlgmr.msra.gmra.mxu0 %vm47_vm2, %v45_v1  ;;  %826 = vmatprep.mubr.msk.f32.mxu1 %vm907_vm1, %v906_v3  ;;  %v137_v9 = vld [vmem:[%s1109_s5 + $0x18] sm:$0xff]  ;;  %v136_v10 = vld [vmem:[%s1109_s5 + $0x10] sm:$0xff]  ;;  %v135_v11 = vld [vmem:[%s1109_s5 + $0x8] sm:$0xff]  ;;  %vm145_vm5 = vcmask 261120   ;;  %s910_s27 = smov [#allocation2]   ;;  %vm753_vm6 = vcmask 130048  }
   0x5   :  { %vm309_vm4 = vcmp.eq.s32.totalorder %v306_v5, %v308_v6  ;;  %829 = vmatprep.subr.mxu0 %v906_v3  ;;  %837 = vmatprep.mubr.msk.f32.mxu0 %vm907_vm1, %v906_v3  ;;  %v134_v12 = vld [vmem:[%s1109_s5] sm:$0xff]  ;;  %v223_v16 = vld [vmem:[%s1111_s7 + $0x18] sm:$0xff]  ;;  %s908_s5 = smov 96   ;;  %v222_v22 = vld [vmem:[%s1111_s7 + $0x10] sm:$0xff]  ;;  %v352_v25 = vsub.s32 0, %v306_v5  ;;  %s762_s28 = sshll.u32 %s910_s27, 4  ;;  %s763_s28 = int_to_ptr.vmem [resolvable:$true] %s762_s28 }
   0x6   :  { %v310_v7 = vsel %vm309_vm4, 1.0, %v304_v4  ;;  %819 = vmatpush3.msra.mxu1 %v137_v9  ;;  %830 = vmatpush3.msra.mxu0 %v223_v16  ;;  %v772_v17 = vld [vmem:[%s1107_s3] ss:$0 sm:$0xff]  ;;  %v221_v23 = vld [vmem:[%s1111_s7 + $0x8] sm:$0xff]  ;;  %v443_v36 = vld [vmem:[%s1113_s9 + $0x18] sm:$0xff]  ;;  %s884_s29 = scalar_lea.vmem %s763_s28, 128  ;;  %p889_p1 = scmp.lt.s32.totalorder %s763_s28, %s763_s28 }
   0x7   :  { %v312_v8 = vsel %vm311_vm3, %v310_v7, 0.0  ;;  %820 = vmatprep.subr.mxu1 %v906_v3  ;;  %831 = vmatprep.subr.mxu0 %v906_v3  ;;  %v220_v24 = vld [vmem:[%s1111_s7] sm:$0xff]  ;;  %v442_v37 = vld [vmem:[%s1113_s9 + $0x10] sm:$0xff]  ;;  %v441_v38 = vld [vmem:[%s1113_s9 + $0x8] sm:$0xff]  ;;  %p885_p0 = scmp.ne.s32.totalorder %s763_s28, %s884_s29  ;;  %p890_p2 = scmp.lt.s32.totalorder %s884_s29, %s884_s29 }
   0x8   :  { %313 = vadd.xlane.f32.xlu0 %v312_v8  ;;  %821 = vmatpush3.msra.mxu1 %v136_v10  ;;  %v773_v31 = vld [vmem:[%s1110_s6] ss:$0 sm:$0xff]  ;;  %v598_v48 = vld [vmem:[%s1115_s11 + $0x18] sm:$0xff]  ;;  %v597_v50 = vld [vmem:[%s1115_s11 + $0x10] sm:$0xff] }
   0x9   :  { %822 = vmatprep.subr.mxu1 %v906_v3  ;;  %832 = vmatpush3.msra.mxu0 %v222_v22  ;;  %v440_v39 = vld [vmem:[%s1113_s9] sm:$0xff]  ;;  %v596_v51 = vld [vmem:[%s1115_s11 + $0x8] sm:$0xff]  ;;  %p891_p3 = por %p890_p2, %p889_p1 }
   0xa   :  { %823 = vmatpush3.msra.mxu1 %v135_v11  ;;  %833 = vmatprep.subr.mxu0 %v906_v3  ;;  %v777_v40 = vld [vmem:[%s1108_s4] ss:$0 sm:$0xff] }
   0xb   :  { %824 = vmatprep.subr.mxu1 %v906_v3  ;;  %834 = vmatpush3.msra.mxu0 %v221_v23  ;;  %v595_v52 = vld [vmem:[%s1115_s11] sm:$0xff]  ;;  %s909_s11 = smov 16   ;;  %p892_p4 = pnand %p891_p3, %p885_p0 }
   0xc   :  { %825 = vmatpush3.msra.mxu1 %v134_v12  ;;  %835 = vmatprep.subr.mxu0 %v906_v3  ;;  %v780_v53 = vld [vmem:[%s1114_s10] ss:$0 sm:$0xff] }
   0xd   :  { %840 = vmatprep.subr.mxu1 %v906_v3  ;;  %836 = vmatpush3.msra.mxu0 %v220_v24  ;;  %v783_v60 = vld [vmem:[%s1116_s12] ss:$0 sm:$0xff] }
   0xe   :  { %845 = vmatprep.subr.mxu0 %v906_v3  ;;  %v775_v0 = vld [vmem:[%s1112_s8] ss:$0 sm:$0xff] }
  0x91   :  { %v314_v13 = vpop.xlane.xlu0 %313 }
  0x92   :  { %v315_v14 = vmax.f32 %v314_v13, 1.0 }
  0x94   :  { %882 = vrsqrt.f32 %v315_v14 }
  0xa1   :  { %v883_v15 = vpop.eup %882 }
  0xa2   :  { %318 = vxpose.xlu1.b32.start.end [1/1] (short) (narrow) %v883_v15, 8  ;;  %v317_v28 = vmul.f32 %v883_v15, %v310_v7 }
  0xc4   :  { %v121_v18 = vpop.f32.mrf.mxu0 }
  0xc5   :  { %v132_v19 = vadd.f32 %v772_v17, %v121_v18  ;;  %363 = vrot.lane.b32.xlu0 %v121_v18, %s908_s5 }
  0xc6   :  { %v817_v20 = vpop.f32.mrf.mxu0 }
  0xc7   :  { %v133_v21 = vmax.f32 %v132_v19, 0.0 }
  0xc9   :  { %827 = vmatmul.mubr.msk.f32.vlgmr.msra.gmra.mxu1 %vm145_vm5, %v133_v21 }
  0xca   :  { %842 = vmatprep.mubr.msk.f32.mxu1 %vm907_vm1, %v906_v3 }
 0x11e   :  { %v334_v26 = vpop.trf.xlu1 }
 0x11f   :  { %v353_v27 = vrot.slane %v334_v26, %v352_v25 }
 0x121   :  { %v354_v29 = vmul.f32 %v353_v27, %v317_v28 }
 0x137   :  { %v364_v30 = vpop.permute.xlu0 %363 }
 0x138   :  { %841 = vmatpush3.msra.mxu1 %v364_v30 }
 0x139   :  { %843 = vmatmul.mubr.msk.f32.vlgmr.msra.gmra.mxu1 %vm311_vm3, %v354_v29  ;;  %856 = vmatprep.subr.mxu1 %v906_v3 }
 0x13a   :  { %858 = vmatprep.mubr.msk.f32.mxu1 %vm907_vm1, %v906_v3 }
 0x189   :  { %v215_v32 = vpop.f32.mrf.mxu1 }
 0x18a   :  { %v216_v33 = vadd.f32 %v773_v31, %v215_v32 }
 0x18b   :  { %v828_v34 = vpop.f32.mrf.mxu1 }
 0x18c   :  { %v219_v35 = vmax.f32 %v216_v33, 0.0 }
 0x18e   :  { %838 = vmatmul.mubr.msk.f32.vlgmr.msra.gmra.mxu0 %vm145_vm5, %v219_v35 }
 0x18f   :  { %846 = vmatpush3.msra.mxu0 %v443_v36  ;;  %853 = vmatprep.mubr.msk.f32.mxu0 %vm907_vm1, %v906_v3 }
 0x190   :  { %847 = vmatprep.subr.mxu0 %v906_v3 }
 0x191   :  { %848 = vmatpush3.msra.mxu0 %v442_v37 }
 0x192   :  { %849 = vmatprep.subr.mxu0 %v906_v3 }
 0x193   :  { %850 = vmatpush3.msra.mxu0 %v441_v38 }
 0x194   :  { %851 = vmatprep.subr.mxu0 %v906_v3 }
 0x195   :  { %852 = vmatpush3.msra.mxu0 %v440_v39 }
 0x196   :  { %872 = vmatprep.subr.mxu0 %v906_v3 }
 0x1f9   :  { %v435_v41 = vpop.f32.mrf.mxu1 }
 0x1fa   :  { %v436_v42 = vadd.f32 %v777_v40, %v435_v41 }
 0x1fb   :  { %v844_v43 = vpop.f32.mrf.mxu1 }
 0x1fc   :  { %v439_v44 = vmax.f32 %v436_v42, 0.0 }
 0x1fe   :  { %854 = vmatmul.mubr.msk.f32.vlgmr.msra.gmra.mxu0 %vm145_vm5, %v439_v44 }
 0x1ff   :  { %874 = vmatprep.mubr.msk.f32.mxu0 %vm907_vm1, %v906_v3 }
 0x24e   :  { %v300_v45 = vpop.f32.mrf.mxu0 }
 0x24f   :  { %v301_v1 = vadd.f32 %v775_v0, %v300_v45 }
 0x250   :  { %v839_v46 = vpop.f32.mrf.mxu0 }
 0x2be   :  { %v513_v47 = vpop.f32.mrf.mxu0 }
 0x2bf   :  { %857 = vmatpush3.msra.mxu1 %v513_v47 }
 0x2c0   :  { %v855_v49 = vpop.f32.mrf.mxu0  ;;  %859 = vmatmul.mubr.msk.f32.vlgmr.msra.gmra.mxu1 %vm311_vm3, %v354_v29  ;;  %861 = vmatprep.subr.mxu1 %v906_v3 }
 0x2c1   :  { %862 = vmatpush3.msra.mxu1 %v598_v48  ;;  %869 = vmatprep.mubr.msk.f32.mxu1 %vm907_vm1, %v906_v3 }
 0x2c2   :  { %863 = vmatprep.subr.mxu1 %v906_v3 }
 0x2c3   :  { %864 = vmatpush3.msra.mxu1 %v597_v50 }
 0x2c4   :  { %865 = vmatprep.subr.mxu1 %v906_v3 }
 0x2c5   :  { %866 = vmatpush3.msra.mxu1 %v596_v51 }
 0x2c6   :  { %867 = vmatprep.subr.mxu1 %v906_v3 }
 0x2c7   :  { %868 = vmatpush3.msra.mxu1 %v595_v52 }
 0x380   :  { %v590_v54 = vpop.f32.mrf.mxu1 }
 0x381   :  { %v591_v55 = vadd.f32 %v780_v53, %v590_v54 }
 0x382   :  { %v860_v56 = vpop.f32.mrf.mxu1 }
 0x383   :  { %v594_v57 = vmax.f32 %v591_v55, 0.0 }
 0x385   :  { %870 = vmatmul.mubr.msk.f32.vlgmr.msra.gmra.mxu1 %vm145_vm5, %v594_v57 }
 0x445   :  { %v668_v58 = vpop.f32.mrf.mxu1 }
 0x446   :  { %873 = vmatpush3.msra.mxu0 %v668_v58 }
 0x447   :  { %v871_v59 = vpop.f32.mrf.mxu1  ;;  %875 = vmatmul.mubr.msk.f32.vlgmr.msra.gmra.mxu0 %vm311_vm3, %v354_v29 }
 0x507   :  { %v745_v61 = vpop.f32.mrf.mxu0 }
 0x508   :  { %v746_v62 = vadd.f32 %v783_v60, %v745_v61 }
 0x509   :  { %v876_v63 = vpop.f32.mrf.mxu0 }
 0x50a   :  { %750 = vrot.lane.b32.xlu1 %v746_v62, %s909_s11 }
 0x57c   :  { %v751_v2 = vpop.permute.xlu1 %750 }
 0x57d   :  { %v754_v3 = vsel %vm753_vm6, %v301_v1, %v751_v2 }
 0x57e   :  { %755 = vst.msk [vmem:[#allocation2] sm:$0xff] %vm145_vm5, %v754_v3 }
 0x57f   :  { %895 = shalt.err (!%p892_p4)
}
 0x580   :  { %765 = dma.vmem_to_hbm [thread:$0]  %s763_s28, 128, %s1117_s13, [#allocation3]  }
 0x581   :  { %904 = dma.done.wait [#allocation3], 128  }
 0x582   :  { %905 = vsyncadd [#allocation3], 4294967168 }
 0x583   :  { %769 = vsyncpa [#allocation3], 1 }

</bundles_post_ra>
